<compile_context>
chip_gen: v7x
topology: tpu7x:2x2x1
jax: 0.10.0
libtpu: 0.0.40
codegen_flags: <defaults>
</compile_context>

<pallas_src>
import functools

import jax
import jax.numpy as jnp
from jax import lax
from jax.experimental import pallas as pl
from jax.experimental.pallas import tpu as pltpu

_SUB = 8                 # sublane granularity of the resident accumulators
_LANE = 128              # lane tile
_MAX_BLOCK_ROWS = 8192   # (8192,128) f32 = 4 MiB/buffer; 2 inputs x 2 bufs = 16 MiB
_EPS = 0.0001
_UNROLL = 8


def _round_up(x, m):
    return ((x + m - 1) // m) * m


def _num_tensorcores():
    """2 on v7x (2 TensorCores/chip), 1 on v5e/v6e and any unknown chip."""
    try:
        kind = jax.devices()[0].device_kind.lower()
    except Exception:
        return 1
    return 2 if ("v7" in kind or "tpu7" in kind) else 1


def _focal_kernel(o_ref, t_ref, acc_ref, *, alpha, beta, use_sigmoid,
                  block_rows, rows, steps, has_core_axis, need_row_mask,
                  unroll):
    """One (block_rows, 128) tile.

    acc_ref is a (2*8, 128) resident accumulator for this core:
      rows 0:8  -> total (pos + neg) focal-loss partials
      rows 8:16 -> pos_num partials
    """
    if has_core_axis:
        c = pl.program_id(0)
        k = pl.program_id(1)
        block_idx = c * steps + k            # logical (unclamped) block index
    else:
        k = pl.program_id(0)
        block_idx = k

    @pl.when(k == 0)
    def _():
        acc_ref[...] = jnp.zeros_like(acc_ref)

    if need_row_mask:
        # Valid rows remaining in this block (may be <= 0 for fully
        # out-of-range duplicate blocks on the core-split path).
        rem = rows - block_idx * block_rows
        sub_iota = lax.broadcasted_iota(jnp.int32, (_SUB, _LANE), 0)

    groups = block_rows // _SUB

    def body(g, carry):
        loss_c, cnt_c = carry
        r0 = pl.multiple_of(g * _SUB, _SUB)
        o = o_ref[pl.ds(r0, _SUB), :].astype(jnp.float32)
        t = t_ref[pl.ds(r0, _SUB), :].astype(jnp.float32)

        if use_sigmoid:
            # Matches torch.clamp(output.sigmoid(), 1e-4, 1 - 1e-4) exactly.
            o = jnp.clip(jax.nn.sigmoid(o), _EPS, 1.0 - _EPS)

        one_minus_o = 1.0 - o
        pos_mask = t == 1.0
        neg_mask = t < 1.0
        if need_row_mask:
            row_ok = sub_iota < (rem - g * _SUB)
            pos_mask = pos_mask & row_ok
            neg_mask = neg_mask & row_ok

        # alpha/beta are Python ints -> integer powers lower to multiplies.
        pos_term = (one_minus_o ** alpha) * jnp.log(o)
        neg_term = ((1.0 - t) ** beta) * (o ** alpha) * jnp.log(one_minus_o)

        # Selects (not multiplies) so -inf/NaN in masked or out-of-bounds
        # lanes never propagates; pos/neg are mutually exclusive so they can
        # share a single accumulator stream.
        loss_c = loss_c + jnp.where(pos_mask, pos_term,
                                    jnp.where(neg_mask, neg_term, 0.0))
        cnt_c = cnt_c + jnp.where(pos_mask, 1.0, 0.0)
        return loss_c, cnt_c

    zeros = jnp.zeros((_SUB, _LANE), jnp.float32)
    loss_p, cnt_p = lax.fori_loop(0, groups, body, (zeros, zeros),
                                  unroll=min(unroll, groups))

    acc_ref[0:_SUB, :] += loss_p
    acc_ref[_SUB:2 * _SUB, :] += cnt_p


def focal_loss(output, target, alpha=2, beta=4, sigmoid=True):
    """Forward pass equivalent to the PyTorch FocalLoss module."""
    # Keep integer exponents integer so x**alpha lowers to multiplies.
    if isinstance(alpha, float) and alpha.is_integer():
        alpha = int(alpha)
    if isinstance(beta, float) and beta.is_integer():
        beta = int(beta)

    o = output.reshape(-1)   # contiguous reshape: no data movement
    t = target.reshape(-1)
    n = o.shape[0]

    # Rare lane-misaligned tail: minimal (<128 element) pad to lane alignment.
    # target=2.0 -> neither pos (==1) nor neg (<1); output=0.5 keeps logs
    # finite even when sigmoid=False.  Lane-aligned inputs take the copy-free
    # path.
    if n % _LANE:
        pad = _LANE - n % _LANE
        o = jnp.pad(o, (0, pad), constant_values=0.5)
        t = jnp.pad(t, (0, pad), constant_values=2.0)

    rows = o.shape[0] // _LANE
    o2 = o.reshape(rows, _LANE)
    t2 = t.reshape(rows, _LANE)

    num_cores = _num_tensorcores()
    block_rows = min(_MAX_BLOCK_ROWS, _round_up(pl.cdiv(rows, num_cores), _SUB))
    num_blocks = pl.cdiv(rows, block_rows)
    steps = pl.cdiv(num_blocks, num_cores)
    # Partial last block / duplicate clamped block is masked in-kernel.
    need_row_mask = (num_cores * steps * block_rows) != rows

    kernel = functools.partial(
        _focal_kernel, alpha=alpha, beta=beta, use_sigmoid=sigmoid,
        block_rows=block_rows, rows=rows, steps=steps,
        has_core_axis=(num_cores > 1), need_row_mask=need_row_mask,
        unroll=_UNROLL)

    if num_cores > 1:
        grid = (num_cores, steps)
        # Clamp so index_map never names a block outside the array; the
        # duplicated block's contribution is zeroed by the in-kernel row mask.
        in_map = lambda c, k: (jnp.minimum(c * steps + k, num_blocks - 1), 0)
        out_map = lambda c, k: (c, 0)
        semantics = (pltpu.CORE_PARALLEL, pltpu.ARBITRARY)
    else:
        grid = (steps,)
        in_map = lambda k: (k, 0)
        out_map = lambda k: (0, 0)
        semantics = (pltpu.ARBITRARY,)

    bytes_accessed = int(n * (o2.dtype.itemsize + t2.dtype.itemsize)
                         + num_cores * 2 * _SUB * _LANE * 4)
    cost = pl.CostEstimate(
        flops=16 * n,
        transcendentals=(3 if sigmoid else 2) * n,
        bytes_accessed=bytes_accessed)

    partials = pl.pallas_call(
        kernel,
        out_shape=jax.ShapeDtypeStruct((num_cores * 2 * _SUB, _LANE), jnp.float32),
        grid_spec=pltpu.PrefetchScalarGridSpec(
            num_scalar_prefetch=0,
            grid=grid,
            in_specs=[
                pl.BlockSpec((block_rows, _LANE), in_map),
                pl.BlockSpec((block_rows, _LANE), in_map),
            ],
            out_specs=pl.BlockSpec((2 * _SUB, _LANE), out_map),
        ),
        compiler_params=pltpu.CompilerParams(
            dimension_semantics=semantics,
            vmem_limit_bytes=48 * 1024 * 1024,
        ),
        cost_estimate=cost,
    )(o2, t2)

    p = partials.reshape(num_cores, 2, _SUB, _LANE)
    total_loss = jnp.sum(p[:, 0])
    pos_num = jnp.sum(p[:, 1])
    # pos_loss == 0 exactly when pos_num == 0, so -total_loss == -neg_loss there.
    return jnp.where(pos_num > 0, -total_loss / pos_num, -total_loss)


def _focal_loss_ref(output, target, alpha=2, beta=4, sigmoid=True):
    """Pure-JAX reference for correctness checking."""
    o = output.astype(jnp.float32)
    t = target.astype(jnp.float32)
    if sigmoid:
        o = jnp.clip(jax.nn.sigmoid(o), _EPS, 1.0 - _EPS)
    pos_index = (t == 1.0).astype(jnp.float32)
    neg_index = (t < 1.0).astype(jnp.float32)
    pos_loss = jnp.sum(((1.0 - o) ** alpha) * jnp.log(o) * pos_index)
    neg_loss = jnp.sum(((1.0 - t) ** beta) * (o ** alpha) * jnp.log(1.0 - o) * neg_index)
    pos_num = jnp.sum(pos_index)
    return jnp.where(pos_num > 0, -(pos_loss + neg_loss) / pos_num, -neg_loss)


if __name__ == "__main__":
    key = jax.random.PRNGKey(0)
    k1, k2, k3, k4 = jax.random.split(key, 4)

    # Case 1: small CenterNet-style NCHW heatmaps, lane-aligned (copy-free path).
    out1 = jax.random.normal(k1, (2, 4, 16, 16), dtype=jnp.float32)
    tgt1 = jax.random.uniform(k2, (2, 4, 16, 16), dtype=jnp.float32)
    tgt1 = tgt1.at[:, :, 8, 8].set(1.0)
    tgt1 = tgt1.at[:, :, 3, 12].set(1.0)
    loss1 = jax.block_until_ready(focal_loss(out1, tgt1, alpha=2, beta=4, sigmoid=True))
    ref1 = _focal_loss_ref(out1, tgt1, 2, 4, True)
    assert jnp.allclose(loss1, ref1, rtol=1e-4, atol=1e-4), (loss1, ref1)

    # Case 2: lane-aligned, but the row count is not a multiple of 8 ->
    # exercises the partial-last-block in-kernel row masking path.
    out2 = jax.random.normal(k3, (2, 4, 20, 16), dtype=jnp.float32)
    tgt2 = jax.random.uniform(k4, (2, 4, 20, 16), dtype=jnp.float32)
    tgt2 = tgt2.at[:, :, 5, 7].set(1.0)
    loss2 = jax.block_until_ready(focal_loss(out2, tgt2, alpha=2, beta=4, sigmoid=True))
    ref2 = _focal_loss_ref(out2, tgt2, 2, 4, True)
    assert jnp.allclose(loss2, ref2, rtol=1e-4, atol=1e-4), (loss2, ref2)

    # Case 3: sigmoid=False on probabilities strictly inside (0, 1), with a
    # lane-misaligned element count (minimal tail-pad path).
    out3 = jax.random.uniform(k1, (2, 3, 9, 11), dtype=jnp.float32,
                              minval=0.05, maxval=0.95)
    tgt3 = jax.random.uniform(k2, (2, 3, 9, 11), dtype=jnp.float32)
    tgt3 = tgt3.at[:, :, 4, 5].set(1.0)
    loss3 = jax.block_until_ready(focal_loss(out3, tgt3, alpha=2, beta=4, sigmoid=False))
    ref3 = _focal_loss_ref(out3, tgt3, 2, 4, False)
    assert jnp.allclose(loss3, ref3, rtol=1e-4, atol=1e-4), (loss3, ref3)

    print("KERNEL_OK")
</pallas_src>

<mosaic_0001>
module attributes {stable_mosaic.version = 11 : i64} {
  func.func @_focal_kernel(%arg0: i32, %arg1: memref<16x128xf32, #tpu.memory_space<vmem>>, %arg2: memref<16x128xf32, #tpu.memory_space<vmem>>, %arg3: memref<16x128xf32, #tpu.memory_space<vmem>>) attributes {dimension_semantics = [#tpu.dimension_semantics<arbitrary>], iteration_bounds = array<i64: 1>, scalar_prefetch = 0 : i64, scratch_operands = 0 : i64, tpu.core_type = #tpu.core_type<tc>, window_params = [{transform_indices = @transform_0, window_bounds = array<i64: 16, 128>}, {transform_indices = @transform_1, window_bounds = array<i64: 16, 128>}, {pipeline_mode = #tpu.pipeline_mode<synchronous>, transform_indices = @transform_2, window_bounds = array<i64: 16, 128>}]} {
    %c0_i32 = arith.constant 0 : i32
    %0 = arith.cmpi eq, %arg0, %c0_i32 : i32
    %1 = arith.extui %0 : i1 to i32
    %c0_i32_0 = arith.constant 0 : i32
    %2 = arith.cmpi ne, %1, %c0_i32_0 : i32
    scf.if %2 {
      %cst_33 = arith.constant 0.000000e+00 : f32
      %90 = vector.broadcast %cst_33 : f32 to vector<16x128xf32>
      %c0_34 = arith.constant 0 : index
      %c0_35 = arith.constant 0 : index
      %91 = vector.load %arg3[%c0_34, %c0_35] : memref<16x128xf32, #tpu.memory_space<vmem>>, vector<16x128xf32>
      tpu.vector_store %arg3[%c0_34, %c0_35], %90 {strides = array<i32>} : memref<16x128xf32, #tpu.memory_space<vmem>>, vector<16x128xf32>,
    } else {
    }
    %cst = arith.constant 0.000000e+00 : f32
    %3 = vector.broadcast %cst : f32 to vector<8x128xf32>
    %c0_i32_1 = arith.constant 0 : i32
    %c8_i32 = arith.constant 8 : i32
    %4 = arith.muli %c0_i32_1, %c8_i32 : i32
    %5 = tpu.assume_multiple %4, 8 : i32
    %6 = arith.index_cast %5 : i32 to index
    %c0 = arith.constant 0 : index
    %7 = vector.load %arg1[%6, %c0] : memref<16x128xf32, #tpu.memory_space<vmem>>, vector<8x128xf32>
    %8 = arith.index_cast %5 : i32 to index
    %c0_2 = arith.constant 0 : index
    %9 = vector.load %arg2[%8, %c0_2] : memref<16x128xf32, #tpu.memory_space<vmem>>, vector<8x128xf32>
    %10 = arith.negf %7 : vector<8x128xf32>
    %11 = math.exp %10 : vector<8x128xf32>
    %cst_3 = arith.constant 1.000000e+00 : f32
    %12 = vector.broadcast %cst_3 : f32 to vector<8x128xf32>
    %13 = arith.addf %12, %11 : vector<8x128xf32>
    %14 = arith.divf %12, %13 : vector<8x128xf32>
    %cst_4 = arith.constant 9.99999974E-5 : f32
    %cst_5 = arith.constant 0.999899983 : f32
    %15 = vector.broadcast %cst_4 : f32 to vector<8x128xf32>
    %16 = arith.maximumf %15, %14 : vector<8x128xf32>
    %17 = vector.broadcast %cst_5 : f32 to vector<8x128xf32>
    %18 = arith.minimumf %17, %16 : vector<8x128xf32>
    %cst_6 = arith.constant 1.000000e+00 : f32
    %19 = vector.broadcast %cst_6 : f32 to vector<8x128xf32>
    %20 = arith.subf %19, %18 : vector<8x128xf32>
    %cst_7 = arith.constant 1.000000e+00 : f32
    %21 = vector.broadcast %cst_7 : f32 to vector<8x128xf32>
    %22 = arith.cmpf oeq, %9, %21 : vector<8x128xf32>
    %cst_8 = arith.constant 1.000000e+00 : f32
    %23 = vector.broadcast %cst_8 : f32 to vector<8x128xf32>
    %24 = arith.cmpf olt, %9, %23 : vector<8x128xf32>
    %25 = arith.mulf %20, %20 : vector<8x128xf32>
    %26 = math.log %18 : vector<8x128xf32>
    %27 = arith.mulf %25, %26 : vector<8x128xf32>
    %cst_9 = arith.constant 1.000000e+00 : f32
    %28 = vector.broadcast %cst_9 : f32 to vector<8x128xf32>
    %29 = arith.subf %28, %9 : vector<8x128xf32>
    %30 = arith.mulf %29, %29 : vector<8x128xf32>
    %31 = arith.mulf %30, %30 : vector<8x128xf32>
    %32 = arith.mulf %18, %18 : vector<8x128xf32>
    %33 = arith.mulf %31, %32 : vector<8x128xf32>
    %34 = math.log %20 : vector<8x128xf32>
    %35 = arith.mulf %33, %34 : vector<8x128xf32>
    %cst_10 = arith.constant 0.000000e+00 : f32
    %36 = vector.broadcast %cst_10 : f32 to vector<8x128xf32>
    %37 = arith.select %24, %35, %36 : vector<8x128xi1>, vector<8x128xf32>
    %38 = arith.select %22, %27, %37 : vector<8x128xi1>, vector<8x128xf32>
    %39 = arith.addf %3, %38 : vector<8x128xf32>
    %cst_11 = arith.constant 1.000000e+00 : f32
    %cst_12 = arith.constant 0.000000e+00 : f32
    %40 = vector.broadcast %cst_11 : f32 to vector<8x128xf32>
    %41 = vector.broadcast %cst_12 : f32 to vector<8x128xf32>
    %42 = arith.select %22, %40, %41 : vector<8x128xi1>, vector<8x128xf32>
    %43 = arith.addf %3, %42 : vector<8x128xf32>
    %c1_i32 = arith.constant 1 : i32
    %c8_i32_13 = arith.constant 8 : i32
    %44 = arith.muli %c1_i32, %c8_i32_13 : i32
    %45 = tpu.assume_multiple %44, 8 : i32
    %46 = arith.index_cast %45 : i32 to index
    %c0_14 = arith.constant 0 : index
    %47 = vector.load %arg1[%46, %c0_14] : memref<16x128xf32, #tpu.memory_space<vmem>>, vector<8x128xf32>
    %48 = arith.index_cast %45 : i32 to index
    %c0_15 = arith.constant 0 : index
    %49 = vector.load %arg2[%48, %c0_15] : memref<16x128xf32, #tpu.memory_space<vmem>>, vector<8x128xf32>
    %50 = arith.negf %47 : vector<8x128xf32>
    %51 = math.exp %50 : vector<8x128xf32>
    %cst_16 = arith.constant 1.000000e+00 : f32
    %52 = vector.broadcast %cst_16 : f32 to vector<8x128xf32>
    %53 = arith.addf %52, %51 : vector<8x128xf32>
    %54 = arith.divf %52, %53 : vector<8x128xf32>
    %cst_17 = arith.constant 9.99999974E-5 : f32
    %cst_18 = arith.constant 0.999899983 : f32
    %55 = vector.broadcast %cst_17 : f32 to vector<8x128xf32>
    %56 = arith.maximumf %55, %54 : vector<8x128xf32>
    %57 = vector.broadcast %cst_18 : f32 to vector<8x128xf32>
    %58 = arith.minimumf %57, %56 : vector<8x128xf32>
    %cst_19 = arith.constant 1.000000e+00 : f32
    %59 = vector.broadcast %cst_19 : f32 to vector<8x128xf32>
    %60 = arith.subf %59, %58 : vector<8x128xf32>
    %cst_20 = arith.constant 1.000000e+00 : f32
    %61 = vector.broadcast %cst_20 : f32 to vector<8x128xf32>
    %62 = arith.cmpf oeq, %49, %61 : vector<8x128xf32>
    %cst_21 = arith.constant 1.000000e+00 : f32
    %63 = vector.broadcast %cst_21 : f32 to vector<8x128xf32>
    %64 = arith.cmpf olt, %49, %63 : vector<8x128xf32>
    %65 = arith.mulf %60, %60 : vector<8x128xf32>
    %66 = math.log %58 : vector<8x128xf32>
    %67 = arith.mulf %65, %66 : vector<8x128xf32>
    %cst_22 = arith.constant 1.000000e+00 : f32
    %68 = vector.broadcast %cst_22 : f32 to vector<8x128xf32>
    %69 = arith.subf %68, %49 : vector<8x128xf32>
    %70 = arith.mulf %69, %69 : vector<8x128xf32>
    %71 = arith.mulf %70, %70 : vector<8x128xf32>
    %72 = arith.mulf %58, %58 : vector<8x128xf32>
    %73 = arith.mulf %71, %72 : vector<8x128xf32>
    %74 = math.log %60 : vector<8x128xf32>
    %75 = arith.mulf %73, %74 : vector<8x128xf32>
    %cst_23 = arith.constant 0.000000e+00 : f32
    %76 = vector.broadcast %cst_23 : f32 to vector<8x128xf32>
    %77 = arith.select %64, %75, %76 : vector<8x128xi1>, vector<8x128xf32>
    %78 = arith.select %62, %67, %77 : vector<8x128xi1>, vector<8x128xf32>
    %79 = arith.addf %39, %78 : vector<8x128xf32>
    %cst_24 = arith.constant 1.000000e+00 : f32
    %cst_25 = arith.constant 0.000000e+00 : f32
    %80 = vector.broadcast %cst_24 : f32 to vector<8x128xf32>
    %81 = vector.broadcast %cst_25 : f32 to vector<8x128xf32>
    %82 = arith.select %62, %80, %81 : vector<8x128xi1>, vector<8x128xf32>
    %83 = arith.addf %43, %82 : vector<8x128xf32>
    %c2_i32 = arith.constant 2 : i32
    %c0_26 = arith.constant 0 : index
    %c0_27 = arith.constant 0 : index
    %84 = vector.load %arg3[%c0_26, %c0_27] : memref<16x128xf32, #tpu.memory_space<vmem>>, vector<8x128xf32>
    %85 = arith.addf %84, %79 : vector<8x128xf32>
    %c0_28 = arith.constant 0 : index
    %c0_29 = arith.constant 0 : index
    %86 = vector.load %arg3[%c0_28, %c0_29] : memref<16x128xf32, #tpu.memory_space<vmem>>, vector<8x128xf32>
    tpu.vector_store %arg3[%c0_28, %c0_29], %85 {strides = array<i32>} : memref<16x128xf32, #tpu.memory_space<vmem>>, vector<8x128xf32>,
    %c8 = arith.constant 8 : index
    %c0_30 = arith.constant 0 : index
    %87 = vector.load %arg3[%c8, %c0_30] : memref<16x128xf32, #tpu.memory_space<vmem>>, vector<8x128xf32>
    %88 = arith.addf %87, %83 : vector<8x128xf32>
    %c8_31 = arith.constant 8 : index
    %c0_32 = arith.constant 0 : index
    %89 = vector.load %arg3[%c8_31, %c0_32] : memref<16x128xf32, #tpu.memory_space<vmem>>, vector<8x128xf32>
    tpu.vector_store %arg3[%c8_31, %c0_32], %88 {strides = array<i32>} : memref<16x128xf32, #tpu.memory_space<vmem>>, vector<8x128xf32>,
    return
  }
  func.func @transform_0(%arg0: i32) -> (i32, i32) {
    %c0_i32 = arith.constant 0 : i32
    %c0_i32_0 = arith.constant 0 : i32
    return %arg0, %c0_i32 : i32, i32
  }
  func.func @transform_1(%arg0: i32) -> (i32, i32) {
    %c0_i32 = arith.constant 0 : i32
    %c0_i32_0 = arith.constant 0 : i32
    return %arg0, %c0_i32 : i32, i32
  }
  func.func @transform_2(%arg0: i32) -> (i32, i32) {
    %c0_i32 = arith.constant 0 : i32
    %c0_i32_0 = arith.constant 0 : i32
    %c0_i32_1 = arith.constant 0 : i32
    return %c0_i32, %c0_i32_0 : i32, i32
  }
}

</mosaic_0001>

<bundles_post_ra>
// kernel: tpu_custom_call.1
= control target key start
LH: loop header
LB: loop body
LE: loop exit
PB: predicated region body
PF: predicated region fallthrough
CT: control target
= control target key end

     0   :  { %7 = vsyncpa [#allocation3], 0  ;;  %s298_s0 = inlined_call_operand.hbm [shape: f32[16,128], index: 0, kind: input, shape index: {}]   ;;  %s299_s1 = inlined_call_operand.hbm [shape: f32[16,128], index: 1, kind: input, shape index: {}]   ;;  %s300_s2 = inlined_call_operand.hbm [shape: f32[16,128], index: 2, kind: output, shape index: {}]  }
   0x1   :  { %8 = vsyncpa [#allocation6], 0 }
   0x2   :  { %9 = vsyncpa [#allocation4], 0  ;;  %s228_s9 = smov [#allocation2]   ;;  %s156_s13 = scalar_lea.hbm %s298_s0, 256 }
   0x3   :  { %s15_s10 = sshll.u32 %s228_s9, 4  ;;  %p157_p0 = scmp.ne.s32.totalorder %s298_s0, %s156_s13  ;;  %s16_s10 = int_to_ptr.vmem [resolvable:$true] %s15_s10 }
   0x4   :  { %p160_p1 = scmp.lt.u32.totalorder %s156_s13, %s298_s0 }
   0x6   :  { %p162_p2 = pnand %p160_p1, %p157_p0 }
   0x8   :  { %165 = shalt.err (!%p162_p2)
}
   0x9   :  { %s166_s18 = scalar_lea.vmem %s16_s10, 256  ;;  %p171_p4 = scmp.lt.s32.totalorder %s16_s10, %s16_s10 }
   0xa   :  { %p167_p3 = scmp.ne.s32.totalorder %s16_s10, %s166_s18  ;;  %p172_p5 = scmp.lt.s32.totalorder %s166_s18, %s166_s18 }
   0xc   :  { %p173_p6 = por %p172_p5, %p171_p4 }
   0xe   :  { %p174_p7 = pnand %p173_p6, %p167_p3 }
  0x10   :  { %177 = shalt.err (!%p174_p7)
}
  0x11   :  { %s229_s19 = smov 128   ;;  %s230_s20 = smov 8  }
  0x12   :  { %21 = dma.hbm_to_vmem [thread:$0]  %s298_s0, 256, %s16_s10, [#allocation3], %s229_s19, %s229_s19, %s230_s20  }
  0x13   :  { %s231_s23 = smov [#allocation5]   ;;  %s178_s27 = scalar_lea.hbm %s299_s1, 256 }
  0x14   :  { %s27_s24 = sshll.u32 %s231_s23, 4  ;;  %p179_p8 = scmp.ne.s32.totalorder %s299_s1, %s178_s27  ;;  %s28_s24 = int_to_ptr.vmem [resolvable:$true] %s27_s24 }
  0x15   :  { %p182_p9 = scmp.lt.u32.totalorder %s178_s27, %s299_s1 }
  0x17   :  { %p184_p10 = pnand %p182_p9, %p179_p8 }
  0x19   :  { %187 = shalt.err (!%p184_p10)
}
  0x1a   :  { %s188_s4 = scalar_lea.vmem %s28_s24, 256  ;;  %p193_p12 = scmp.lt.s32.totalorder %s28_s24, %s28_s24 }
  0x1b   :  { %p189_p11 = scmp.ne.s32.totalorder %s28_s24, %s188_s4  ;;  %p194_p13 = scmp.lt.s32.totalorder %s188_s4, %s188_s4 }
  0x1d   :  { %p195_p0 = por %p194_p13, %p193_p12 }
  0x1f   :  { %p196_p1 = pnand %p195_p0, %p189_p11 }
  0x21   :  { %199 = shalt.err (!%p196_p1)
}
  0x22   :  { %33 = dma.hbm_to_vmem [thread:$0]  %s299_s1, 256, %s28_s24, [#allocation6], %s229_s19, %s229_s19, %s230_s20  }
  0x23   :  { %222 = dma.done.wait [#allocation3], 256  }
  0x24   :  { %223 = vsyncadd [#allocation3], 4294967040 }
  0x25   :  { %224 = dma.done.wait [#allocation6], 256  }
  0x26   :  { %225 = vsyncadd [#allocation6], 4294967040  ;;  %v46_v0 = vld [vmem:[#allocation2] sm:$0xff]  ;;  %v47_v1 = vld [vmem:[#allocation5] sm:$0xff]  ;;  %v232_v6 = vmov 0.0   ;;  %s233_s1 = smov [#allocation7]  }
  0x27   :  { %v77_v2 = vld [vmem:[#allocation2 + $0x8] sm:$0xff]  ;;  %v132_v3 = vmul.f32 -1.442695, %v46_v0  ;;  %vm57_vm0 = vcmp.eq.f32.partialorder %v47_v1, 1.0  ;;  %v79_v4 = vld [vmem:[#allocation5 + $0x8] sm:$0xff]  ;;  %v63_v19 = vsub.f32 1.0, %v47_v1 }
  0x28   :  { %v133_v5 = vmul.f32 -1.442695, %v77_v2  ;;  %vm89_vm1 = vcmp.eq.f32.partialorder %v79_v4, 1.0  ;;  %v74_v7 = vsel %vm57_vm0, 1.0, %v232_v6  ;;  %v95_v22 = vsub.f32 1.0, %v79_v4  ;;  %s119_s6 = sshll.u32 %s233_s1, 4  ;;  %s120_s6 = int_to_ptr.vmem [resolvable:$true] %s119_s6 }
  0x29   :  { %140 = vpow2.f32 %v132_v3  ;;  %v106_v8 = vsel %vm89_vm1, 1.0, %v232_v6  ;;  %v64_v24 = vmul.f32 %v63_v19, %v63_v19  ;;  %vm58_vm2 = vcmp.lt.f32.partialorder %v47_v1, 1.0  ;;  %s200_s7 = scalar_lea.vmem %s120_s6, 256  ;;  %p205_p3 = scmp.lt.s32.totalorder %s120_s6, %s120_s6 }
  0x2a   :  { %142 = vpow2.f32 %v133_v5  ;;  %v107_v9 = vadd.f32 %v106_v8, %v74_v7  ;;  %v96_v25 = vmul.f32 %v95_v22, %v95_v22  ;;  %vm90_vm3 = vcmp.lt.f32.partialorder %v79_v4, 1.0  ;;  %p201_p2 = scmp.ne.s32.totalorder %s120_s6, %s200_s7  ;;  %p206_p4 = scmp.lt.s32.totalorder %s200_s7, %s200_s7 }
  0x2b   :  { %v65_v26 = vmul.f32 %v64_v24, %v64_v24 }
  0x2c   :  { %113 = vst [vmem:[#allocation7 + $0x8] sm:$0xff] %v107_v9  ;;  %v97_v28 = vmul.f32 %v96_v25, %v96_v25  ;;  %p207_p5 = por %p206_p4, %p205_p3 }
  0x2e   :  { %p208_p6 = pnand %p207_p5, %p201_p2 }
  0x33   :  { %v141_v10 = vpop.eup %140 }
  0x34   :  { %v143_v11 = vpop.eup %142  ;;  %v51_v12 = vadd.f32 1.0, %v141_v10 }
  0x35   :  { %v83_v13 = vadd.f32 1.0, %v143_v11 }
  0x36   :  { %144 = vrcp.f32 %v51_v12 }
  0x37   :  { %146 = vrcp.f32 %v83_v13 }
  0x40   :  { %v145_v14 = vpop.eup %144 }
  0x41   :  { %v147_v15 = vpop.eup %146  ;;  %v54_v16 = vmax.f32 %v145_v14, 0.0001 }
  0x42   :  { %v86_v17 = vmax.f32 %v147_v15, 0.0001 }
  0x43   :  { %v55_v18 = vmin.f32 %v54_v16, 0.9999 }
  0x44   :  { %v87_v20 = vmin.f32 %v86_v17, 0.9999 }
  0x45   :  { %v56_v21 = vsub.f32 1.0, %v55_v18  ;;  %148 = vlog2.f32 %v55_v18  ;;  %v66_v27 = vmul.f32 %v55_v18, %v55_v18 }
  0x46   :  { %v88_v23 = vsub.f32 1.0, %v87_v20  ;;  %150 = vlog2.f32 %v87_v20  ;;  %v98_v29 = vmul.f32 %v87_v20, %v87_v20 }
  0x47   :  { %152 = vlog2.f32 %v56_v21  ;;  %v59_v31 = vmul.f32 %v56_v21, %v56_v21  ;;  %v67_v34 = vmul.f32 %v66_v27, %v65_v26 }
  0x48   :  { %154 = vlog2.f32 %v88_v23  ;;  %v91_v35 = vmul.f32 %v88_v23, %v88_v23  ;;  %v99_v38 = vmul.f32 %v98_v29, %v97_v28 }
  0x4f   :  { %v149_v30 = vpop.eup %148 }
  0x50   :  { %v151_v32 = vpop.eup %150  ;;  %v61_v33 = vmul.f32 0.6931472, %v149_v30 }
  0x51   :  { %v153_v36 = vpop.eup %152  ;;  %v93_v37 = vmul.f32 0.6931472, %v151_v32 }
  0x52   :  { %v155_v39 = vpop.eup %154  ;;  %v69_v40 = vmul.f32 0.6931472, %v153_v36  ;;  %v62_v41 = vmul.f32 %v61_v33, %v59_v31 }
  0x53   :  { %v101_v42 = vmul.f32 0.6931472, %v155_v39  ;;  %v94_v44 = vmul.f32 %v93_v37, %v91_v35 }
  0x54   :  { %v70_v43 = vmul.f32 %v69_v40, %v67_v34 }
  0x55   :  { %v102_v45 = vmul.f32 %v101_v42, %v99_v38 }
  0x56   :  { %v71_v46 = vsel %vm58_vm2, %v70_v43, 0.0 }
  0x57   :  { %v72_v47 = vsel %vm57_vm0, %v62_v41, %v71_v46  ;;  %v103_v48 = vsel %vm90_vm3, %v102_v45, 0.0 }
  0x58   :  { %v104_v49 = vsel %vm89_vm1, %v94_v44, %v103_v48 }
  0x59   :  { %v105_v50 = vadd.f32 %v104_v49, %v72_v47 }
  0x5b   :  { %110 = vst [vmem:[#allocation7] sm:$0xff] %v105_v50 }
  0x5c   :  { %211 = shalt.err (!%p208_p6)
}
  0x5d   :  { %s212_s10 = scalar_lea.hbm %s300_s2, 256 }
  0x5e   :  { %p213_p7 = scmp.ne.s32.totalorder %s300_s2, %s212_s10  ;;  %p216_p8 = scmp.lt.u32.totalorder %s212_s10, %s300_s2 }
  0x60   :  { %p218_p9 = pnand %p216_p8, %p213_p7 }
  0x62   :  { %221 = shalt.err (!%p218_p9)
}
  0x63   :  { %125 = dma.vmem_to_hbm [thread:$0]  %s120_s6, 256, %s300_s2, [#allocation4], %s229_s19, %s229_s19, %s230_s20  }
  0x64   :  { %226 = dma.done.wait [#allocation4], 256  }
  0x65   :  { %227 = vsyncadd [#allocation4], 4294967040 }
  0x66   :  { %129 = vsyncpa [#allocation3], 1 }
  0x67   :  { %130 = vsyncpa [#allocation6], 1 }
  0x68   :  { %131 = vsyncpa [#allocation4], 1 }

</bundles_post_ra>
